<compile_context>
chip_gen: v5e
topology: v5e:2x2
jax: 0.10.0
libtpu: 0.0.40
codegen_flags: <defaults>
</compile_context>

<pallas_src>
import functools

import jax
import jax.numpy as jnp
from jax.experimental import pallas as pl
from jax.experimental.pallas import tpu as pltpu

_NEG_BIG = -1e30  # finite "-inf" for padded output lanes (exp underflows to exactly 0)


def _round_up(x, m):
    return ((x + m - 1) // m) * m


def _mlp_kernel(n_layers, *refs):
    """Fused MLP forward over one batch tile.

    refs = (x_ref, W0_ref, b0_ref, W1_ref, b1_ref, ..., Wout_ref, bout_ref, out_ref)
    Weights arrive in bf16 (MXU-native); accumulation, bias add, ReLU and
    log_softmax all run in f32.
    """
    in_refs = refs[:-1]
    out_ref = refs[-1]

    h = in_refs[0][...].astype(jnp.float32)
    idx = 1
    for li in range(n_layers):
        w = in_refs[idx][...]       # bf16 (in, out) -- VMEM-resident across grid steps
        b = in_refs[idx + 1][...]   # f32  (1, out)
        idx += 2
        h = jnp.dot(h.astype(jnp.bfloat16), w,
                    preferred_element_type=jnp.float32) + b
        if li < n_layers - 1:
            h = jnp.maximum(h, 0.0)  # ReLU; dropout -> identity (eval mode)

    # log_softmax over the feature axis (dim=1). Padded output lanes carry a
    # huge negative bias -> exp == 0 -> they do not perturb the real classes.
    m = jnp.max(h, axis=-1, keepdims=True)
    s = h - m
    lse = jnp.log(jnp.sum(jnp.exp(s), axis=-1, keepdims=True))
    out_ref[...] = (s - lse).astype(out_ref.dtype)


def mlp_forward(x, params, *, tile_b=512):
    """x: (B, input_size) f32. params: list of (W (in,out) f32, b (1,out) f32)."""
    n_layers = len(params)
    B, in_features = x.shape
    out_features = params[-1][0].shape[1]

    # --- Lane-dense output: pad the output Linear to a multiple of 128 columns.
    out_pad = _round_up(out_features, 128)
    w_out, b_out = params[-1]
    if out_pad != out_features:
        w_out = jnp.pad(w_out, ((0, 0), (0, out_pad - out_features)))
        b_out = jnp.pad(b_out, ((0, 0), (0, out_pad - out_features)),
                        constant_values=_NEG_BIG)
    padded_params = list(params[:-1]) + [(w_out, b_out)]

    # Weights in bf16 for the MXU; biases stay f32 (added to the f32 accumulator).
    flat_params = []
    for w, b in padded_params:
        flat_params.append(w.astype(jnp.bfloat16))
        flat_params.append(b.astype(jnp.float32))

    # --- Batch tiling: grid over batch -> DMA/compute pipelining + v7x megacore.
    tile_b = max(8, min(tile_b, _round_up(B, 8)))
    b_pad = _round_up(B, tile_b)
    if b_pad != B:
        x = jnp.pad(x, ((0, b_pad - B), (0, 0)))
    grid = (b_pad // tile_b,)

    kernel = functools.partial(_mlp_kernel, n_layers)

    in_specs = [pl.BlockSpec((tile_b, in_features), lambda i: (i, 0))]
    for arr in flat_params:
        in_specs.append(pl.BlockSpec(arr.shape, lambda i: (0, 0)))  # resident
    out_specs = pl.BlockSpec((tile_b, out_pad), lambda i: (i, 0))

    flops = 2 * b_pad * sum(w.shape[0] * w.shape[1] for w, _ in padded_params)
    bytes_accessed = (x.size * x.dtype.itemsize
                      + sum(a.size * a.dtype.itemsize for a in flat_params)
                      + b_pad * out_pad * 4)
    cost = pl.CostEstimate(flops=flops,
                           transcendentals=b_pad * (out_pad + 1),
                           bytes_accessed=bytes_accessed)

    out = pl.pallas_call(
        kernel,
        out_shape=jax.ShapeDtypeStruct((b_pad, out_pad), jnp.float32),
        grid=grid,
        in_specs=in_specs,
        out_specs=out_specs,
        compiler_params=pltpu.CompilerParams(
            dimension_semantics=("parallel",),
            vmem_limit_bytes=32 * 1024 * 1024,
        ),
        cost_estimate=cost,
    )(x, *flat_params)

    return out[:B, :out_features]


def init_params(key, input_size, hidden_layers, output_size):
    """Deterministic init mimicking nn.Linear (uniform(-1/sqrt(fan_in), +))."""
    sizes = [input_size] + list(hidden_layers) + [output_size]
    params = []
    for fan_in, fan_out in zip(sizes[:-1], sizes[1:]):
        key, kw, kb = jax.random.split(key, 3)
        bound = 1.0 / (fan_in ** 0.5)
        w = jax.random.uniform(kw, (fan_in, fan_out), jnp.float32, -bound, bound)
        b = jax.random.uniform(kb, (1, fan_out), jnp.float32, -bound, bound)
        params.append((w, b))
    return params


def reference_forward(x, params):
    """Pure-JAX f32 reference matching the PyTorch module in eval mode."""
    h = x
    for i, (w, b) in enumerate(params):
        h = h @ w + b
        if i < len(params) - 1:
            h = jnp.maximum(h, 0.0)
    return jax.nn.log_softmax(h, axis=1)


if __name__ == "__main__":
    # Shapes consistent with: Network(input_size=32, output_size=16, hidden_layers=[64, 32])
    input_size, output_size, hidden_layers = 32, 16, [64, 32]

    key = jax.random.PRNGKey(0)
    key, kx, kx2 = jax.random.split(key, 3)
    params = init_params(key, input_size, hidden_layers, output_size)

    # Small demo batch (single grid step).
    x = jax.random.normal(kx, (8, input_size), jnp.float32)
    out = jax.block_until_ready(mlp_forward(x, params))
    ref = reference_forward(x, params)
    assert out.shape == (8, output_size)
    assert jnp.allclose(out, ref, atol=5e-2, rtol=5e-2), "mismatch vs JAX reference (small batch)"

    # Larger, non-multiple batch to exercise the batch grid + padding path.
    x2 = jax.random.normal(kx2, (300, input_size), jnp.float32)
    out2 = jax.block_until_ready(mlp_forward(x2, params, tile_b=128))
    ref2 = reference_forward(x2, params)
    assert out2.shape == (300, output_size)
    assert jnp.allclose(out2, ref2, atol=5e-2, rtol=5e-2), "mismatch vs JAX reference (tiled batch)"

    print("KERNEL_OK")
</pallas_src>

<mosaic_0001>
module attributes {stable_mosaic.version = 11 : i64} {
  func.func @_mlp_kernel(%arg0: i32, %arg1: memref<8x32xf32, #tpu.memory_space<vmem>>, %arg2: memref<32x64xbf16, #tpu.memory_space<vmem>>, %arg3: memref<1x64xf32, #tpu.memory_space<vmem>>, %arg4: memref<64x32xbf16, #tpu.memory_space<vmem>>, %arg5: memref<1x32xf32, #tpu.memory_space<vmem>>, %arg6: memref<32x128xbf16, #tpu.memory_space<vmem>>, %arg7: memref<1x128xf32, #tpu.memory_space<vmem>>, %arg8: memref<8x128xf32, #tpu.memory_space<vmem>>) attributes {dimension_semantics = [#tpu.dimension_semantics<parallel>], iteration_bounds = array<i64: 1>, scalar_prefetch = 0 : i64, scratch_operands = 0 : i64, tpu.core_type = #tpu.core_type<tc>, window_params = [{transform_indices = @transform_0, window_bounds = array<i64: 8, 32>}, {pipeline_mode = #tpu.pipeline_mode<synchronous>, transform_indices = @transform_1, window_bounds = array<i64: 32, 64>}, {pipeline_mode = #tpu.pipeline_mode<synchronous>, transform_indices = @transform_2, window_bounds = array<i64: 1, 64>}, {pipeline_mode = #tpu.pipeline_mode<synchronous>, transform_indices = @transform_3, window_bounds = array<i64: 64, 32>}, {pipeline_mode = #tpu.pipeline_mode<synchronous>, transform_indices = @transform_4, window_bounds = array<i64: 1, 32>}, {pipeline_mode = #tpu.pipeline_mode<synchronous>, transform_indices = @transform_5, window_bounds = array<i64: 32, 128>}, {pipeline_mode = #tpu.pipeline_mode<synchronous>, transform_indices = @transform_6, window_bounds = array<i64: 1, 128>}, {transform_indices = @transform_7, window_bounds = array<i64: 8, 128>}]} {
    %c0 = arith.constant 0 : index
    %c0_0 = arith.constant 0 : index
    %0 = vector.load %arg1[%c0, %c0_0] : memref<8x32xf32, #tpu.memory_space<vmem>>, vector<8x32xf32>
    %c0_1 = arith.constant 0 : index
    %c0_2 = arith.constant 0 : index
    %1 = vector.load %arg2[%c0_1, %c0_2] : memref<32x64xbf16, #tpu.memory_space<vmem>>, vector<32x64xbf16>
    %c0_3 = arith.constant 0 : index
    %c0_4 = arith.constant 0 : index
    %2 = vector.load %arg3[%c0_3, %c0_4] : memref<1x64xf32, #tpu.memory_space<vmem>>, vector<1x64xf32>
    %3 = arith.truncf %0 : vector<8x32xf32> to vector<8x32xbf16>
    %cst = arith.constant dense<0.000000e+00> : vector<8x64xf32>
    %4 = tpu.matmul %3, %1, %cst {dimension_numbers = #tpu.dot_dimension_numbers<[1], [0], [0], [1], [0, 0, 1, 1], [], []>} : vector<8x32xbf16>, vector<32x64xbf16>, vector<8x64xf32> -> vector<8x64xf32>
    %5 = vector.broadcast %2 : vector<1x64xf32> to vector<8x64xf32>
    %6 = arith.addf %4, %5 : vector<8x64xf32>
    %cst_5 = arith.constant 0.000000e+00 : f32
    %7 = vector.broadcast %cst_5 : f32 to vector<8x64xf32>
    %8 = arith.maximumf %6, %7 : vector<8x64xf32>
    %c0_6 = arith.constant 0 : index
    %c0_7 = arith.constant 0 : index
    %9 = vector.load %arg4[%c0_6, %c0_7] : memref<64x32xbf16, #tpu.memory_space<vmem>>, vector<64x32xbf16>
    %c0_8 = arith.constant 0 : index
    %c0_9 = arith.constant 0 : index
    %10 = vector.load %arg5[%c0_8, %c0_9] : memref<1x32xf32, #tpu.memory_space<vmem>>, vector<1x32xf32>
    %11 = arith.truncf %8 : vector<8x64xf32> to vector<8x64xbf16>
    %cst_10 = arith.constant dense<0.000000e+00> : vector<8x32xf32>
    %12 = tpu.matmul %11, %9, %cst_10 {dimension_numbers = #tpu.dot_dimension_numbers<[1], [0], [0], [1], [0, 0, 1, 1], [], []>} : vector<8x64xbf16>, vector<64x32xbf16>, vector<8x32xf32> -> vector<8x32xf32>
    %13 = vector.broadcast %10 : vector<1x32xf32> to vector<8x32xf32>
    %14 = arith.addf %12, %13 : vector<8x32xf32>
    %cst_11 = arith.constant 0.000000e+00 : f32
    %15 = vector.broadcast %cst_11 : f32 to vector<8x32xf32>
    %16 = arith.maximumf %14, %15 : vector<8x32xf32>
    %c0_12 = arith.constant 0 : index
    %c0_13 = arith.constant 0 : index
    %17 = vector.load %arg6[%c0_12, %c0_13] : memref<32x128xbf16, #tpu.memory_space<vmem>>, vector<32x128xbf16>
    %c0_14 = arith.constant 0 : index
    %c0_15 = arith.constant 0 : index
    %18 = vector.load %arg7[%c0_14, %c0_15] : memref<1x128xf32, #tpu.memory_space<vmem>>, vector<1x128xf32>
    %19 = arith.truncf %16 : vector<8x32xf32> to vector<8x32xbf16>
    %cst_16 = arith.constant dense<0.000000e+00> : vector<8x128xf32>
    %20 = tpu.matmul %19, %17, %cst_16 {dimension_numbers = #tpu.dot_dimension_numbers<[1], [0], [0], [1], [0, 0, 1, 1], [], []>} : vector<8x32xbf16>, vector<32x128xbf16>, vector<8x128xf32> -> vector<8x128xf32>
    %21 = vector.broadcast %18 : vector<1x128xf32> to vector<8x128xf32>
    %22 = arith.addf %20, %21 : vector<8x128xf32>
    %cst_17 = arith.constant dense<0xFF800000> : vector<8xf32>
    %23 = vector.multi_reduction <maximumf>, %22, %cst_17 [1] : vector<8x128xf32> to vector<8xf32>
    %24 = vector.shape_cast %23 : vector<8xf32> to vector<8x1xf32>
    %25 = vector.broadcast %24 : vector<8x1xf32> to vector<8x128xf32>
    %26 = arith.subf %22, %25 : vector<8x128xf32>
    %27 = math.exp %26 : vector<8x128xf32>
    %cst_18 = arith.constant dense<0.000000e+00> : vector<8xf32>
    %28 = vector.multi_reduction <add>, %27, %cst_18 [1] : vector<8x128xf32> to vector<8xf32>
    %29 = vector.shape_cast %28 : vector<8xf32> to vector<8x1xf32>
    %30 = math.log %29 : vector<8x1xf32>
    %31 = vector.broadcast %30 : vector<8x1xf32> to vector<8x128xf32>
    %32 = arith.subf %26, %31 : vector<8x128xf32>
    %c0_19 = arith.constant 0 : index
    %c0_20 = arith.constant 0 : index
    %33 = vector.load %arg8[%c0_19, %c0_20] : memref<8x128xf32, #tpu.memory_space<vmem>>, vector<8x128xf32>
    tpu.vector_store %arg8[%c0_19, %c0_20], %32 {strides = array<i32>} : memref<8x128xf32, #tpu.memory_space<vmem>>, vector<8x128xf32>,
    return
  }
  func.func @transform_0(%arg0: i32) -> (i32, i32) {
    %c0_i32 = arith.constant 0 : i32
    %c0_i32_0 = arith.constant 0 : i32
    return %arg0, %c0_i32 : i32, i32
  }
  func.func @transform_1(%arg0: i32) -> (i32, i32) {
    %c0_i32 = arith.constant 0 : i32
    %c0_i32_0 = arith.constant 0 : i32
    %c0_i32_1 = arith.constant 0 : i32
    return %c0_i32, %c0_i32_0 : i32, i32
  }
  func.func @transform_2(%arg0: i32) -> (i32, i32) {
    %c0_i32 = arith.constant 0 : i32
    %c0_i32_0 = arith.constant 0 : i32
    %c0_i32_1 = arith.constant 0 : i32
    return %c0_i32, %c0_i32_0 : i32, i32
  }
  func.func @transform_3(%arg0: i32) -> (i32, i32) {
    %c0_i32 = arith.constant 0 : i32
    %c0_i32_0 = arith.constant 0 : i32
    %c0_i32_1 = arith.constant 0 : i32
    return %c0_i32, %c0_i32_0 : i32, i32
  }
  func.func @transform_4(%arg0: i32) -> (i32, i32) {
    %c0_i32 = arith.constant 0 : i32
    %c0_i32_0 = arith.constant 0 : i32
    %c0_i32_1 = arith.constant 0 : i32
    return %c0_i32, %c0_i32_0 : i32, i32
  }
  func.func @transform_5(%arg0: i32) -> (i32, i32) {
    %c0_i32 = arith.constant 0 : i32
    %c0_i32_0 = arith.constant 0 : i32
    %c0_i32_1 = arith.constant 0 : i32
    return %c0_i32, %c0_i32_0 : i32, i32
  }
  func.func @transform_6(%arg0: i32) -> (i32, i32) {
    %c0_i32 = arith.constant 0 : i32
    %c0_i32_0 = arith.constant 0 : i32
    %c0_i32_1 = arith.constant 0 : i32
    return %c0_i32, %c0_i32_0 : i32, i32
  }
  func.func @transform_7(%arg0: i32) -> (i32, i32) {
    %c0_i32 = arith.constant 0 : i32
    %c0_i32_0 = arith.constant 0 : i32
    return %arg0, %c0_i32 : i32, i32
  }
}

</mosaic_0001>

<bundles_post_ra>
// kernel: tpu_custom_call.1
= control target key start
LH: loop header
LB: loop body
LE: loop exit
PB: predicated region body
PF: predicated region fallthrough
CT: control target
= control target key end

     0   :  { %s346_s0 = inlined_call_operand.vmem [shape: f32[8,32], index: 0, kind: input, shape index: {}]   ;;  %s347_s1 = inlined_call_operand.vmem [shape: bf16[32,64], index: 1, kind: input, shape index: {}]   ;;  %s348_s2 = inlined_call_operand.vmem [shape: f32[1,64], index: 2, kind: input, shape index: {}]   ;;  %s349_s3 = inlined_call_operand.vmem [shape: bf16[64,32], index: 3, kind: input, shape index: {}]   ;;  %s350_s4 = inlined_call_operand.vmem [shape: f32[1,32], index: 4, kind: input, shape index: {}]   ;;  %s351_s5 = inlined_call_operand.vmem [shape: bf16[32,128], index: 5, kind: input, shape index: {}]   ;;  %s352_s6 = inlined_call_operand.vmem [shape: f32[1,128], index: 6, kind: input, shape index: {}]   ;;  %s353_s7 = inlined_call_operand.hbm [shape: f32[8,128], index: 7, kind: output, shape index: {}]  }
   0x1   :  { %v223_v0 = vld [vmem:[%s347_s1 + $0x8] sm:$0xff]  ;;  %v222_v1 = vld [vmem:[%s347_s1] sm:$0xff]  ;;  %v227_v2 = vld [vmem:[%s349_s3 + $0x18] sm:$0xff] }
   0x2   :  { %60 = vmatpush.bf16.msra.mxu0 %v223_v0  ;;  %v28_v3 = vld [vmem:[%s346_s0] sm:$0xff]  ;;  %113 = vmatpush.bf16.msra.mxu1 %v227_v2  ;;  %v226_v4 = vld [vmem:[%s349_s3 + $0x10] sm:$0xff] }
   0x3   :  { %12 = vsyncpa [#allocation3], 0  ;;  %v34_v5 = vpack.c.bf16 %v28_v3, %v28_v3  ;;  %vm50_vm0 = vcmask 261120   ;;  %v225_v6 = vld [vmem:[%s349_s3 + $0x8] sm:$0xff]  ;;  %v224_v7 = vld [vmem:[%s349_s3] sm:$0xff]  ;;  %vm105_vm1 = vcmask 523264  }
   0x4   :  { %v231_v8 = vld [vmem:[%s348_s2] ss:$0 sm:$0xff]  ;;  %v229_v14 = vld [vmem:[%s351_s5 + $0x8] sm:$0xff]  ;;  %s178_s23 = sshll.u32 %s353_s7, 4  ;;  %s179_s23 = int_to_ptr.hbm [resolvable:$true] %s178_s23 }
   0x5   :  { %153 = vmatpush.bf16.msra.mxu2 %v229_v14  ;;  %v228_v15 = vld [vmem:[%s351_s5] sm:$0xff] }
   0x6   :  { %61 = vmatpush.bf16.msra.mxu0 %v222_v1  ;;  %114 = vmatpush.bf16.msra.mxu1 %v226_v4  ;;  %v232_v16 = vld [vmem:[%s350_s4] ss:$0 sm:$0xff]  ;;  %s264_s4 = smov [#allocation2]  }
   0x7   :  { %v233_v22 = vld [vmem:[%s352_s6] ss:$0 sm:$0xff]  ;;  %s176_s5 = sshll.u32 %s264_s4, 4  ;;  %s177_s5 = int_to_ptr.vmem [resolvable:$true] %s176_s5 }
   0x9   :  { %195 = vmatmul.msk.bf16.vlgmr.msra.gmra.mxu0 %vm50_vm0, %v34_v5  ;;  %154 = vmatpush.bf16.msra.mxu2 %v228_v15 }
   0xa   :  { %115 = vmatpush.bf16.msra.mxu1 %v225_v6 }
   0xe   :  { %116 = vmatpush.bf16.msra.mxu1 %v224_v7 }
  0x86   :  { %v63_v9 = vpop.f32.mrf.mxu0 }
  0x87   :  { %v64_v10 = vadd.f32 %v231_v8, %v63_v9 }
  0x89   :  { %v67_v11 = vmax.f32 %v64_v10, 0.0 }
  0x8b   :  { %v77_v12 = vpack.c.bf16 %v67_v11, %v67_v11 }
  0x8d   :  { %212 = vmatmul.msk.bf16.vlgmr.msra.gmra.mxu1 %vm105_vm1, %v77_v12 }
  0x8e   :  { %v65_v13 = vpop.f32.mrf.mxu0 }
 0x10a   :  { %v118_v17 = vpop.f32.mrf.mxu1 }
 0x10b   :  { %v119_v18 = vadd.f32 %v232_v16, %v118_v17 }
 0x10d   :  { %v122_v19 = vmax.f32 %v119_v18, 0.0 }
 0x10f   :  { %v128_v20 = vpack.c.bf16 %v122_v19, %v122_v19 }
 0x111   :  { %221 = vmatmul.msk.bf16.vlgmr.msra.gmra.mxu2 %vm50_vm0, %v128_v20 }
 0x112   :  { %v120_v21 = vpop.f32.mrf.mxu1 }
 0x194   :  { %v156_v23 = vpop.f32.mrf.mxu2 }
 0x195   :  { %v157_v24 = vadd.f32 %v233_v22, %v156_v23 }
 0x197   :  { %160 = vmax.xlane.f32.xlu0 %v157_v24 }
 0x19c   :  { %v158_v25 = vpop.f32.mrf.mxu2 }
 0x20a   :  { %v161_v26 = vpop.xlane.xlu0 %160 }
 0x20b   :  { %v162_v27 = vsub.f32 %v157_v24, %v161_v26 }
 0x20d   :  { %v163_v28 = vmul.f32 1.442695, %v162_v27 }
 0x20f   :  { %234 = vpow2.f32 %v163_v28 }
 0x215   :  { %v235_v29 = vpop.eup %234 }
 0x216   :  { %165 = vadd.xlane.f32.xlu0 %v235_v29 }
 0x289   :  { %v166_v30 = vpop.xlane.xlu0 %165 }
 0x28a   :  { %236 = vlog2.f32 %v166_v30 }
 0x290   :  { %v237_v31 = vpop.eup %236 }
 0x291   :  { %v168_v32 = vmul.f32 0.6931472, %v237_v31 }
 0x293   :  { %v169_v33 = vsub.f32 %v162_v27, %v168_v32 }
 0x295   :  { %170 = vst [vmem:[#allocation2] sm:$0xff] %v169_v33 }
 0x296   :  { %181 = dma.vmem_to_hbm [thread:$0]  %s177_s5, 128, %s179_s23, [#allocation3]  }
 0x297   :  { %262 = dma.done.wait [#allocation3], 128  }
 0x298   :  { %263 = vsyncadd [#allocation3], 4294967168 }
 0x299   :  { %186 = vsyncpa [#allocation3], 1 }

</bundles_post_ra>
